<compile_context>
chip_gen: v7x
topology: tpu7x:2x2x1
jax: 0.10.0
libtpu: 0.0.40
codegen_flags: <defaults>
</compile_context>

<pallas_src>
import functools
import math

import jax
import jax.numpy as jnp
from jax import lax
from jax.experimental import pallas as pl
from jax.experimental.pallas import tpu as pltpu


def _embedding_kernel(ids_ref, lut_ref, out_ref, *, scale):
    # ids_ref: (n_pad,) int32 token ids in SMEM (scalar-prefetched, full array).
    # lut_ref: (vocab, d_pad) embedding table, VMEM-resident across all steps.
    # out_ref: (t_blk, d_pad) dense output block.
    t_blk = out_ref.shape[0]
    base = pl.program_id(0) * t_blk

    def body(g, carry):
        # Gather 8 rows (one output sublane tile) then emit one aligned,
        # unmasked full-tile store.
        rows = []
        for j in range(8):                              # static unroll in-tile
            tok = ids_ref[base + g * 8 + j]             # scalar SMEM read
            rows.append(lut_ref[pl.ds(tok, 1), :])      # (1, d_pad) dynamic row
        tile = jnp.concatenate(rows, axis=0).astype(jnp.float32)   # (8, d_pad)
        start = pl.multiple_of(g * 8, 8)
        out_ref[pl.ds(start, 8), :] = (tile * scale).astype(out_ref.dtype)
        return carry

    lax.fori_loop(0, t_blk // 8, body, 0)


def _vmem_capacity_bytes():
    try:
        cap = getattr(pltpu.get_tpu_info(), "vmem_capacity_bytes", None)
        if cap:
            return int(cap)
    except Exception:
        pass
    return 64 << 20  # conservative default: v7x per-TensorCore VMEM


def embeddings_forward(x, lut, *, block_tokens=None):
    """x: int (batch, seq) token ids; lut: (vocab, d_model) table (f32 or bf16)."""
    vocab, d_model = lut.shape
    batch, seq = x.shape
    n_tok = batch * seq
    scale = math.sqrt(d_model)

    vmem_cap = _vmem_capacity_bytes()
    vmem_budget = vmem_cap - (16 << 20)        # ~48 MiB on v7x, ~112 MiB on v5e/v6e

    # Lane-dense output: pad d_model to a multiple of 128 (sliced off below).
    d_pad = pl.cdiv(d_model, 128) * 128
    lut_p = lut if d_pad == d_model else jnp.pad(lut, ((0, 0), (0, d_pad - d_model)))
    lut_bytes = vocab * d_pad * lut_p.dtype.itemsize

    # Resident-LUT strategy: the table is DMA'd into VMEM once and reused.
    # TODO(synk): add a memory_space=pl.ANY + scalar-prefetched per-row
    # pltpu.make_async_copy DMA-gather path for tables that do not fit in VMEM.
    assert lut_bytes + (8 << 20) <= vmem_budget, "table too large for resident-VMEM path"

    # Token block: multiple of 8 sublanes; per-block VMEM no longer scales with
    # vocab, so go big (smaller on v7x's 64 MiB/TC budget).
    if block_tokens is None:
        block_tokens = 256 if vmem_cap <= (64 << 20) else 512
    t_blk = max(8, min(block_tokens, pl.cdiv(n_tok, 8) * 8))
    n_pad = pl.cdiv(n_tok, t_blk) * t_blk

    # Clamp so a bad token can never read outside the table (PyTorch raises
    # IndexError instead -- documented divergence).  Padded tail tokens alias
    # id 0 and are sliced off below.
    ids = jnp.clip(x.reshape(n_tok).astype(jnp.int32), 0, vocab - 1)
    if n_pad != n_tok:
        ids = jnp.pad(ids, (0, n_pad - n_tok))

    out_bytes = t_blk * d_pad * lut_p.dtype.itemsize
    kernel = functools.partial(_embedding_kernel, scale=scale)

    def build(single_buffer_lut):
        lut_copies = 1 if single_buffer_lut else 2
        vmem_needed = lut_copies * lut_bytes + 2 * out_bytes + (4 << 20)
        vmem_limit = int(min(max(vmem_needed, 32 << 20), vmem_budget))
        if single_buffer_lut:
            lut_spec = pl.BlockSpec((vocab, d_pad), lambda i, ids_ref: (0, 0),
                                    pipeline_mode=pl.Buffered(1))
        else:
            lut_spec = pl.BlockSpec((vocab, d_pad), lambda i, ids_ref: (0, 0))
        return pl.pallas_call(
            kernel,
            out_shape=jax.ShapeDtypeStruct((n_pad, d_pad), lut_p.dtype),
            grid_spec=pltpu.PrefetchScalarGridSpec(
                num_scalar_prefetch=1,                  # ids -> SMEM
                grid=(n_pad // t_blk,),
                in_specs=[lut_spec],
                out_specs=pl.BlockSpec((t_blk, d_pad), lambda i, ids_ref: (i, 0)),
            ),
            compiler_params=pltpu.CompilerParams(
                dimension_semantics=("parallel",),      # tokens independent; v7x 2-TC shard
                vmem_limit_bytes=vmem_limit,
            ),
        )

    try:
        out_flat = build(single_buffer_lut=True)(ids, lut_p)
    except Exception:
        # Fallback if this JAX build rejects pl.Buffered(1): same semantics,
        # default double-buffered LUT (2x resident-table VMEM).
        out_flat = build(single_buffer_lut=False)(ids, lut_p)

    return out_flat[:n_tok, :d_model].reshape(batch, seq, d_model)


if __name__ == "__main__":
    # Small, deterministic synthetic setup.
    batch, seq = 2, 8
    vocab, d_model = 64, 128

    key = jax.random.PRNGKey(0)
    k_lut, k_ids = jax.random.split(key)

    # nn.Embedding default init ~ N(0, 1); deterministic synthetic weights here.
    lut = jax.random.normal(k_lut, (vocab, d_model), dtype=jnp.float32)
    x = jax.random.randint(k_ids, (batch, seq), 0, vocab, dtype=jnp.int32)

    out = embeddings_forward(x, lut)
    out = jax.block_until_ready(out)

    # Reference check in plain JAX (same semantics as the PyTorch forward).
    ref = lut[x] * math.sqrt(d_model)
    assert out.shape == (batch, seq, d_model)
    assert jnp.allclose(out, ref, atol=1e-5, rtol=1e-5)

    print("KERNEL_OK")
</pallas_src>

<mosaic_0001>
module attributes {stable_mosaic.version = 11 : i64} {
  func.func @_embedding_kernel(%arg0: i32, %arg1: memref<16xi32, #tpu.memory_space<smem>>, %arg2: memref<64x128xf32, #tpu.memory_space<vmem>>, %arg3: memref<16x128xf32, #tpu.memory_space<vmem>>) attributes {dimension_semantics = [#tpu.dimension_semantics<parallel>], iteration_bounds = array<i64: 1>, scalar_prefetch = 1 : i64, scratch_operands = 0 : i64, tpu.core_type = #tpu.core_type<tc>, window_params = [{pipeline_mode = #tpu.pipeline_mode<synchronous>, transform_indices = @transform_0, window_bounds = array<i64: 64, 128>}, {transform_indices = @transform_1, window_bounds = array<i64: 16, 128>}]} {
    %c16_i32 = arith.constant 16 : i32
    %0 = arith.muli %arg0, %c16_i32 : i32
    %c0_i32 = arith.constant 0 : i32
    %c2_i32 = arith.constant 2 : i32
    %1 = arith.addi %c0_i32, %c2_i32 : i32
    %c1_i32 = arith.constant 1 : i32
    scf.for %arg4 = %c0_i32 to %1 step %c1_i32  : i32 {
      %c8_i32 = arith.constant 8 : i32
      %2 = arith.muli %arg4, %c8_i32 : i32
      %3 = arith.addi %0, %2 : i32
      %c0_i32_1 = arith.constant 0 : i32
      %4 = arith.addi %3, %c0_i32_1 : i32
      %5 = arith.index_cast %4 : i32 to index
      %6 = memref.load %arg1[%5] : memref<16xi32, #tpu.memory_space<smem>>
      %7 = arith.index_cast %6 : i32 to index
      %c0 = arith.constant 0 : index
      %8 = vector.load %arg2[%7, %c0] : memref<64x128xf32, #tpu.memory_space<vmem>>, vector<1x128xf32>
      %c8_i32_2 = arith.constant 8 : i32
      %9 = arith.muli %arg4, %c8_i32_2 : i32
      %10 = arith.addi %0, %9 : i32
      %c1_i32_3 = arith.constant 1 : i32
      %11 = arith.addi %10, %c1_i32_3 : i32
      %12 = arith.index_cast %11 : i32 to index
      %13 = memref.load %arg1[%12] : memref<16xi32, #tpu.memory_space<smem>>
      %14 = arith.index_cast %13 : i32 to index
      %c0_4 = arith.constant 0 : index
      %15 = vector.load %arg2[%14, %c0_4] : memref<64x128xf32, #tpu.memory_space<vmem>>, vector<1x128xf32>
      %c8_i32_5 = arith.constant 8 : i32
      %16 = arith.muli %arg4, %c8_i32_5 : i32
      %17 = arith.addi %0, %16 : i32
      %c2_i32_6 = arith.constant 2 : i32
      %18 = arith.addi %17, %c2_i32_6 : i32
      %19 = arith.index_cast %18 : i32 to index
      %20 = memref.load %arg1[%19] : memref<16xi32, #tpu.memory_space<smem>>
      %21 = arith.index_cast %20 : i32 to index
      %c0_7 = arith.constant 0 : index
      %22 = vector.load %arg2[%21, %c0_7] : memref<64x128xf32, #tpu.memory_space<vmem>>, vector<1x128xf32>
      %c8_i32_8 = arith.constant 8 : i32
      %23 = arith.muli %arg4, %c8_i32_8 : i32
      %24 = arith.addi %0, %23 : i32
      %c3_i32 = arith.constant 3 : i32
      %25 = arith.addi %24, %c3_i32 : i32
      %26 = arith.index_cast %25 : i32 to index
      %27 = memref.load %arg1[%26] : memref<16xi32, #tpu.memory_space<smem>>
      %28 = arith.index_cast %27 : i32 to index
      %c0_9 = arith.constant 0 : index
      %29 = vector.load %arg2[%28, %c0_9] : memref<64x128xf32, #tpu.memory_space<vmem>>, vector<1x128xf32>
      %c8_i32_10 = arith.constant 8 : i32
      %30 = arith.muli %arg4, %c8_i32_10 : i32
      %31 = arith.addi %0, %30 : i32
      %c4_i32 = arith.constant 4 : i32
      %32 = arith.addi %31, %c4_i32 : i32
      %33 = arith.index_cast %32 : i32 to index
      %34 = memref.load %arg1[%33] : memref<16xi32, #tpu.memory_space<smem>>
      %35 = arith.index_cast %34 : i32 to index
      %c0_11 = arith.constant 0 : index
      %36 = vector.load %arg2[%35, %c0_11] : memref<64x128xf32, #tpu.memory_space<vmem>>, vector<1x128xf32>
      %c8_i32_12 = arith.constant 8 : i32
      %37 = arith.muli %arg4, %c8_i32_12 : i32
      %38 = arith.addi %0, %37 : i32
      %c5_i32 = arith.constant 5 : i32
      %39 = arith.addi %38, %c5_i32 : i32
      %40 = arith.index_cast %39 : i32 to index
      %41 = memref.load %arg1[%40] : memref<16xi32, #tpu.memory_space<smem>>
      %42 = arith.index_cast %41 : i32 to index
      %c0_13 = arith.constant 0 : index
      %43 = vector.load %arg2[%42, %c0_13] : memref<64x128xf32, #tpu.memory_space<vmem>>, vector<1x128xf32>
      %c8_i32_14 = arith.constant 8 : i32
      %44 = arith.muli %arg4, %c8_i32_14 : i32
      %45 = arith.addi %0, %44 : i32
      %c6_i32 = arith.constant 6 : i32
      %46 = arith.addi %45, %c6_i32 : i32
      %47 = arith.index_cast %46 : i32 to index
      %48 = memref.load %arg1[%47] : memref<16xi32, #tpu.memory_space<smem>>
      %49 = arith.index_cast %48 : i32 to index
      %c0_15 = arith.constant 0 : index
      %50 = vector.load %arg2[%49, %c0_15] : memref<64x128xf32, #tpu.memory_space<vmem>>, vector<1x128xf32>
      %c8_i32_16 = arith.constant 8 : i32
      %51 = arith.muli %arg4, %c8_i32_16 : i32
      %52 = arith.addi %0, %51 : i32
      %c7_i32 = arith.constant 7 : i32
      %53 = arith.addi %52, %c7_i32 : i32
      %54 = arith.index_cast %53 : i32 to index
      %55 = memref.load %arg1[%54] : memref<16xi32, #tpu.memory_space<smem>>
      %56 = arith.index_cast %55 : i32 to index
      %c0_17 = arith.constant 0 : index
      %57 = vector.load %arg2[%56, %c0_17] : memref<64x128xf32, #tpu.memory_space<vmem>>, vector<1x128xf32>
      %58 = tpu.concatenate %8, %15, %22, %29, %36, %43, %50, %57 in 0 : vector<1x128xf32>, vector<1x128xf32>, vector<1x128xf32>, vector<1x128xf32>, vector<1x128xf32>, vector<1x128xf32>, vector<1x128xf32>, vector<1x128xf32> -> vector<8x128xf32>
      %c8_i32_18 = arith.constant 8 : i32
      %59 = arith.muli %arg4, %c8_i32_18 : i32
      %60 = tpu.assume_multiple %59, 8 : i32
      %cst = arith.constant 11.3137083 : f32
      %61 = vector.broadcast %cst : f32 to vector<8x128xf32>
      %62 = arith.mulf %58, %61 : vector<8x128xf32>
      %63 = arith.index_cast %60 : i32 to index
      %c0_19 = arith.constant 0 : index
      %64 = vector.load %arg3[%63, %c0_19] : memref<16x128xf32, #tpu.memory_space<vmem>>, vector<8x128xf32>
      tpu.vector_store %arg3[%63, %c0_19], %62 {strides = array<i32>} : memref<16x128xf32, #tpu.memory_space<vmem>>, vector<8x128xf32>,
    }
    %c2_i32_0 = arith.constant 2 : i32
    return
  }
  func.func @transform_0(%arg0: i32, %arg1: memref<16xi32, #tpu.memory_space<smem>>) -> (i32, i32) {
    %c0_i32 = arith.constant 0 : i32
    %c0_i32_0 = arith.constant 0 : i32
    %c0_i32_1 = arith.constant 0 : i32
    return %c0_i32, %c0_i32_0 : i32, i32
  }
  func.func @transform_1(%arg0: i32, %arg1: memref<16xi32, #tpu.memory_space<smem>>) -> (i32, i32) {
    %c0_i32 = arith.constant 0 : i32
    %c0_i32_0 = arith.constant 0 : i32
    return %arg0, %c0_i32 : i32, i32
  }
}

module attributes {stable_mosaic.version = 11 : i64} {
  func.func @_embedding_kernel(%arg0: i32, %arg1: memref<16xi32, #tpu.memory_space<smem>>, %arg2: memref<64x128xf32, #tpu.memory_space<vmem>>, %arg3: memref<16x128xf32, #tpu.memory_space<vmem>>) attributes {dimension_semantics = [#tpu.dimension_semantics<parallel>], iteration_bounds = array<i64: 1>, scalar_prefetch = 1 : i64, scratch_operands = 0 : i64, tpu.core_type = #tpu.core_type<tc>, window_params = [{pipeline_mode = #tpu.pipeline_mode<synchronous>, transform_indices = @transform_0, window_bounds = array<i64: 64, 128>}, {transform_indices = @transform_1, window_bounds = array<i64: 16, 128>}]} {
    %c16_i32 = arith.constant 16 : i32
    %0 = arith.muli %arg0, %c16_i32 : i32
    %c0_i32 = arith.constant 0 : i32
    %c2_i32 = arith.constant 2 : i32
    %1 = arith.addi %c0_i32, %c2_i32 : i32
    %c1_i32 = arith.constant 1 : i32
    scf.for %arg4 = %c0_i32 to %1 step %c1_i32  : i32 {
      %c8_i32 = arith.constant 8 : i32
      %2 = arith.muli %arg4, %c8_i32 : i32
      %3 = arith.addi %0, %2 : i32
      %c0_i32_1 = arith.constant 0 : i32
      %4 = arith.addi %3, %c0_i32_1 : i32
      %5 = arith.index_cast %4 : i32 to index
      %6 = memref.load %arg1[%5] : memref<16xi32, #tpu.memory_space<smem>>
      %7 = arith.index_cast %6 : i32 to index
      %c0 = arith.constant 0 : index
      %8 = vector.load %arg2[%7, %c0] : memref<64x128xf32, #tpu.memory_space<vmem>>, vector<1x128xf32>
      %c8_i32_2 = arith.constant 8 : i32
      %9 = arith.muli %arg4, %c8_i32_2 : i32
      %10 = arith.addi %0, %9 : i32
      %c1_i32_3 = arith.constant 1 : i32
      %11 = arith.addi %10, %c1_i32_3 : i32
      %12 = arith.index_cast %11 : i32 to index
      %13 = memref.load %arg1[%12] : memref<16xi32, #tpu.memory_space<smem>>
      %14 = arith.index_cast %13 : i32 to index
      %c0_4 = arith.constant 0 : index
      %15 = vector.load %arg2[%14, %c0_4] : memref<64x128xf32, #tpu.memory_space<vmem>>, vector<1x128xf32>
      %c8_i32_5 = arith.constant 8 : i32
      %16 = arith.muli %arg4, %c8_i32_5 : i32
      %17 = arith.addi %0, %16 : i32
      %c2_i32_6 = arith.constant 2 : i32
      %18 = arith.addi %17, %c2_i32_6 : i32
      %19 = arith.index_cast %18 : i32 to index
      %20 = memref.load %arg1[%19] : memref<16xi32, #tpu.memory_space<smem>>
      %21 = arith.index_cast %20 : i32 to index
      %c0_7 = arith.constant 0 : index
      %22 = vector.load %arg2[%21, %c0_7] : memref<64x128xf32, #tpu.memory_space<vmem>>, vector<1x128xf32>
      %c8_i32_8 = arith.constant 8 : i32
      %23 = arith.muli %arg4, %c8_i32_8 : i32
      %24 = arith.addi %0, %23 : i32
      %c3_i32 = arith.constant 3 : i32
      %25 = arith.addi %24, %c3_i32 : i32
      %26 = arith.index_cast %25 : i32 to index
      %27 = memref.load %arg1[%26] : memref<16xi32, #tpu.memory_space<smem>>
      %28 = arith.index_cast %27 : i32 to index
      %c0_9 = arith.constant 0 : index
      %29 = vector.load %arg2[%28, %c0_9] : memref<64x128xf32, #tpu.memory_space<vmem>>, vector<1x128xf32>
      %c8_i32_10 = arith.constant 8 : i32
      %30 = arith.muli %arg4, %c8_i32_10 : i32
      %31 = arith.addi %0, %30 : i32
      %c4_i32 = arith.constant 4 : i32
      %32 = arith.addi %31, %c4_i32 : i32
      %33 = arith.index_cast %32 : i32 to index
      %34 = memref.load %arg1[%33] : memref<16xi32, #tpu.memory_space<smem>>
      %35 = arith.index_cast %34 : i32 to index
      %c0_11 = arith.constant 0 : index
      %36 = vector.load %arg2[%35, %c0_11] : memref<64x128xf32, #tpu.memory_space<vmem>>, vector<1x128xf32>
      %c8_i32_12 = arith.constant 8 : i32
      %37 = arith.muli %arg4, %c8_i32_12 : i32
      %38 = arith.addi %0, %37 : i32
      %c5_i32 = arith.constant 5 : i32
      %39 = arith.addi %38, %c5_i32 : i32
      %40 = arith.index_cast %39 : i32 to index
      %41 = memref.load %arg1[%40] : memref<16xi32, #tpu.memory_space<smem>>
      %42 = arith.index_cast %41 : i32 to index
      %c0_13 = arith.constant 0 : index
      %43 = vector.load %arg2[%42, %c0_13] : memref<64x128xf32, #tpu.memory_space<vmem>>, vector<1x128xf32>
      %c8_i32_14 = arith.constant 8 : i32
      %44 = arith.muli %arg4, %c8_i32_14 : i32
      %45 = arith.addi %0, %44 : i32
      %c6_i32 = arith.constant 6 : i32
      %46 = arith.addi %45, %c6_i32 : i32
      %47 = arith.index_cast %46 : i32 to index
      %48 = memref.load %arg1[%47] : memref<16xi32, #tpu.memory_space<smem>>
      %49 = arith.index_cast %48 : i32 to index
      %c0_15 = arith.constant 0 : index
      %50 = vector.load %arg2[%49, %c0_15] : memref<64x128xf32, #tpu.memory_space<vmem>>, vector<1x128xf32>
      %c8_i32_16 = arith.constant 8 : i32
      %51 = arith.muli %arg4, %c8_i32_16 : i32
      %52 = arith.addi %0, %51 : i32
      %c7_i32 = arith.constant 7 : i32
      %53 = arith.addi %52, %c7_i32 : i32
      %54 = arith.index_cast %53 : i32 to index
      %55 = memref.load %arg1[%54] : memref<16xi32, #tpu.memory_space<smem>>
      %56 = arith.index_cast %55 : i32 to index
      %c0_17 = arith.constant 0 : index
      %57 = vector.load %arg2[%56, %c0_17] : memref<64x128xf32, #tpu.memory_space<vmem>>, vector<1x128xf32>
      %58 = tpu.concatenate %8, %15, %22, %29, %36, %43, %50, %57 in 0 : vector<1x128xf32>, vector<1x128xf32>, vector<1x128xf32>, vector<1x128xf32>, vector<1x128xf32>, vector<1x128xf32>, vector<1x128xf32>, vector<1x128xf32> -> vector<8x128xf32>
      %c8_i32_18 = arith.constant 8 : i32
      %59 = arith.muli %arg4, %c8_i32_18 : i32
      %60 = tpu.assume_multiple %59, 8 : i32
      %cst = arith.constant 11.3137083 : f32
      %61 = vector.broadcast %cst : f32 to vector<8x128xf32>
      %62 = arith.mulf %58, %61 : vector<8x128xf32>
      %63 = arith.index_cast %60 : i32 to index
      %c0_19 = arith.constant 0 : index
      %64 = vector.load %arg3[%63, %c0_19] : memref<16x128xf32, #tpu.memory_space<vmem>>, vector<8x128xf32>
      tpu.vector_store %arg3[%63, %c0_19], %62 {strides = array<i32>} : memref<16x128xf32, #tpu.memory_space<vmem>>, vector<8x128xf32>,
    }
    %c2_i32_0 = arith.constant 2 : i32
    return
  }
  func.func @transform_0(%arg0: i32, %arg1: memref<16xi32, #tpu.memory_space<smem>>) -> (i32, i32) {
    %c0_i32 = arith.constant 0 : i32
    %c0_i32_0 = arith.constant 0 : i32
    %c0_i32_1 = arith.constant 0 : i32
    return %c0_i32, %c0_i32_0 : i32, i32
  }
  func.func @transform_1(%arg0: i32, %arg1: memref<16xi32, #tpu.memory_space<smem>>) -> (i32, i32) {
    %c0_i32 = arith.constant 0 : i32
    %c0_i32_0 = arith.constant 0 : i32
    return %arg0, %c0_i32 : i32, i32
  }
}

</mosaic_0001>

<bundles_post_ra>
// kernel: tpu_custom_call.1
= control target key start
LH: loop header
LB: loop body
LE: loop exit
PB: predicated region body
PF: predicated region fallthrough
CT: control target
= control target key end

     0   :  { %s303_s0 = inlined_call_operand.hbm [shape: s32[16], index: 0, kind: input, shape index: {}]   ;;  %s304_s1 = inlined_call_operand.hbm [shape: f32[64,128], index: 1, kind: input, shape index: {}]   ;;  %s305_s2 = inlined_call_operand.hbm [shape: f32[16,128], index: 2, kind: output, shape index: {}]  }
   0x1   :  { %s152_s11 = scalar_lea.hbm %s303_s0, 16 }
   0x2   :  { %p153_p0 = scmp.ne.s32.totalorder %s303_s0, %s152_s11  ;;  %p156_p1 = scmp.lt.u32.totalorder %s152_s11, %s303_s0 }
   0x4   :  { %p158_p2 = pnand %p156_p1, %p153_p0 }
   0x6   :  { %161 = shalt.err (!%p158_p2)  }
   0x7   :  { %s220_s16 = smov [#allocation3]  }
   0x8   :  { %8 = dma.hbm_to_smem %s303_s0, 16, %s220_s16, [#allocation2] }
   0x9   :  { %210 = dma.done.wait [#allocation2], 16 }
   0xa   :  { %211 = vsyncadd [#allocation2], 4294967280 }
   0xb   :  { %10 = sfence }
   0xc   :  { %11 = vsyncpa [#allocation5], 0 }
   0xd   :  { %12 = vsyncpa [#allocation6], 0  ;;  %s221_s19 = smov [#allocation4]   ;;  %s162_s23 = scalar_lea.hbm %s304_s1, 1024 }
   0xe   :  { %s18_s20 = sshll.u32 %s221_s19, 4  ;;  %p163_p3 = scmp.ne.s32.totalorder %s304_s1, %s162_s23  ;;  %s19_s20 = int_to_ptr.vmem [resolvable:$true] %s18_s20 }
   0xf   :  { %p166_p4 = scmp.lt.u32.totalorder %s162_s23, %s304_s1 }
  0x11   :  { %p168_p5 = pnand %p166_p4, %p163_p3 }
  0x13   :  { %171 = shalt.err (!%p168_p5)
}
  0x14   :  { %s172_s0 = scalar_lea.vmem %s19_s20, 1024  ;;  %p177_p7 = scmp.lt.s32.totalorder %s19_s20, %s19_s20 }
  0x15   :  { %p173_p6 = scmp.ne.s32.totalorder %s19_s20, %s172_s0  ;;  %p178_p8 = scmp.lt.s32.totalorder %s172_s0, %s172_s0 }
  0x17   :  { %p179_p9 = por %p178_p8, %p177_p7 }
  0x19   :  { %p180_p10 = pnand %p179_p9, %p173_p6 }
  0x1b   :  { %183 = shalt.err (!%p180_p10)
}
  0x1c   :  { %s222_s28 = smov 128   ;;  %s223_s29 = smov 8  }
  0x1d   :  { %24 = dma.hbm_to_vmem [thread:$0]  %s304_s1, 1024, %s19_s20, [#allocation5], %s222_s28, %s222_s28, %s223_s29  }
  0x1e   :  { %212 = dma.done.wait [#allocation5], 1024  }
  0x1f   :  { %213 = vsyncadd [#allocation5], 4294966272  ;;  %s267_s4 = smov 0  }
  0x20 LB: > { %s273_s5 = sshll.u32 %s218_s4, 3  ;;  %vm89_vm0 = vcmask 1040384   ;;  %vm91_vm1 = vcmask 1041408   ;;  %vm93_vm2 = vcmask 1042432   ;;  %vm95_vm3 = vcmask 1043456   ;;  %s34_s4 = sadd.s32 1, %s218_s4   ;;  %s218_s4 = sphi %s267_s4, %s34_s4  }
  0x21   : > { %s37_s1 = sld [smem:[#allocation3 + %s273_s5]]  ;;  %s40_s6 = sadd.s32 1, %s273_s5  ;;  %vm97_vm4 = vcmask 1044480   ;;  %vm99_vm5 = vcmask 1045504   ;;  %vm101_vm6 = vcmask 1046528  }
  0x22   : > { %s41_s7 = sld [smem:[#allocation3 + %s40_s6]]  ;;  %s44_s8 = sadd.s32 2, %s273_s5 }
  0x23   : > { %s45_s9 = sld [smem:[#allocation3 + %s44_s8]]  ;;  %s48_s10 = sadd.s32 3, %s273_s5 }
  0x24   : > { %s49_s11 = sld [smem:[#allocation3 + %s48_s10]]  ;;  %s52_s12 = sadd.s32 4, %s273_s5 }
  0x25   : > { %s53_s13 = sld [smem:[#allocation3 + %s52_s12]]  ;;  %s56_s14 = sadd.s32 5, %s273_s5 }
  0x26   : > { %s57_s15 = sld [smem:[#allocation3 + %s56_s14]]  ;;  %s60_s16 = sadd.s32 6, %s273_s5 }
  0x27   : > { %s61_s17 = sld [smem:[#allocation3 + %s60_s16]]  ;;  %s64_s18 = sadd.s32 7, %s273_s5 }
  0x28   : > { %s38_s19 = scalar_lea.vmem [#allocation4], %s37_s1  ;;  %s42_s20 = scalar_lea.vmem [#allocation4], %s41_s7 }
  0x29   : > { %v39_v0 = vld [vmem:[%s38_s19] sm:$0x1]  ;;  %s65_s21 = sld [smem:[#allocation3 + %s64_s18]]  ;;  %s46_s22 = scalar_lea.vmem [#allocation4], %s45_s9 }
  0x2a   : > { %v43_v1 = vld [vmem:[%s42_s20] sm:$0x1]  ;;  %s50_s23 = scalar_lea.vmem [#allocation4], %s49_s11  ;;  %s104_s0 = scalar_lea.vmem [#allocation7], %s273_s5 }
  0x2b   : > { %v47_v2 = vld [vmem:[%s46_s22] sm:$0x1]  ;;  %v69_v3 = vrot.slane %v43_v1, 7  ;;  %s54_s24 = scalar_lea.vmem [#allocation4], %s53_s13  ;;  %p31_p11 = scmp.ge.s32.totalorder %s34_s4, 2  }
  0x2c   : > { %v51_v4 = vld [vmem:[%s50_s23] sm:$0x1]  ;;  %v72_v5 = vrot.slane %v47_v2, 6  ;;  %s58_s25 = scalar_lea.vmem [#allocation4], %s57_s15  ;;  %s224_s30 = smov (%p31_p11), [#allocation7]  }
  0x2d   : > { %v55_v6 = vld [vmem:[%s54_s24] sm:$0x1]  ;;  %v75_v7 = vrot.slane %v51_v4, 5  ;;  %v90_v8 = vsel %vm89_vm0, %v39_v0, %v69_v3  ;;  %s62_s26 = scalar_lea.vmem [#allocation4], %s61_s17  ;;  %s111_s3 = sshll.u32 (%p31_p11), %s224_s30, 4  ;;  %s112_s3 = int_to_ptr.vmem [resolvable:$true] %s111_s3 }
  0x2e   : > { %v59_v9 = vld [vmem:[%s58_s25] sm:$0x1]  ;;  %v78_v10 = vrot.slane %v55_v6, 4  ;;  %v92_v11 = vsel %vm91_vm1, %v90_v8, %v72_v5  ;;  %s184_s1 = scalar_lea.vmem (%p31_p11), %s112_s3, 256  ;;  %p189_p13 = scmp.lt.s32.totalorder (%p31_p11), %s112_s3, %s112_s3 }
  0x2f   : > { %v63_v12 = vld [vmem:[%s62_s26] sm:$0x1]  ;;  %v81_v13 = vrot.slane %v59_v9, 3  ;;  %v94_v14 = vsel %vm93_vm2, %v92_v11, %v75_v7  ;;  %s66_s27 = scalar_lea.vmem [#allocation4], %s65_s21  ;;  %p185_p12 = scmp.ne.s32.totalorder (%p31_p11), %s112_s3, %s184_s1 }
  0x30   : > { %v84_v15 = vrot.slane %v63_v12, 2  ;;  %v96_v16 = vsel %vm95_vm3, %v94_v14, %v78_v10  ;;  %v67_v17 = vld [vmem:[%s66_s27] sm:$0x1]  ;;  %33 = sbr.rel (!%p31_p11) target bundleno = 32 (0x20), region = 44  ;;  %p190_p0 = scmp.lt.s32.totalorder (%p31_p11), %s184_s1, %s184_s1 }
  0x31   : > { %v98_v18 = vsel %vm97_vm4, %v96_v16, %v81_v13  ;;  %v87_v19 = vrot.slane %v67_v17, 1 }
  0x32   : > { %v100_v20 = vsel %vm99_vm5, %v98_v18, %v84_v15  ;;  %p191_p1 = por (%p31_p11), %p190_p0, %p189_p13 }
  0x33   : > { %v102_v21 = vsel %vm101_vm6, %v100_v20, %v87_v19 }
  0x34   : > { %v103_v22 = vmul.f32 11.313708, %v102_v21  ;;  %p192_p2 = pnand (%p31_p11), %p191_p1, %p185_p12 }
  0x36   : > { %105 = vst [vmem:[%s104_s0] sm:$0xff] %v103_v22 }
  0x37   :  { %195 = shalt.err (!%p192_p2)
}
  0x38   :  { %s196_s5 = scalar_lea.hbm %s305_s2, 256 }
  0x39   :  { %p197_p3 = scmp.ne.s32.totalorder %s305_s2, %s196_s5  ;;  %p200_p4 = scmp.lt.u32.totalorder %s196_s5, %s305_s2 }
  0x3b   :  { %p202_p5 = pnand %p200_p4, %p197_p3 }
  0x3d   :  { %205 = shalt.err (!%p202_p5)
}
  0x3e   :  { %117 = dma.vmem_to_hbm [thread:$0]  %s112_s3, 256, %s305_s2, [#allocation6], %s222_s28, %s222_s28, %s223_s29  }
  0x3f   :  { %214 = dma.done.wait [#allocation6], 256  }
  0x40   :  { %215 = vsyncadd [#allocation6], 4294967040 }
  0x41   :  { %121 = vsyncpa [#allocation5], 1 }
  0x42   :  { %122 = vsyncpa [#allocation6], 1 }

// kernel: tpu_custom_call.1
= control target key start
LH: loop header
LB: loop body
LE: loop exit
PB: predicated region body
PF: predicated region fallthrough
CT: control target
= control target key end

     0   :  { %s303_s0 = inlined_call_operand.hbm [shape: s32[16], index: 0, kind: input, shape index: {}]   ;;  %s304_s1 = inlined_call_operand.hbm [shape: f32[64,128], index: 1, kind: input, shape index: {}]   ;;  %s305_s2 = inlined_call_operand.hbm [shape: f32[16,128], index: 2, kind: output, shape index: {}]  }
   0x1   :  { %s152_s11 = scalar_lea.hbm %s303_s0, 16 }
   0x2   :  { %p153_p0 = scmp.ne.s32.totalorder %s303_s0, %s152_s11  ;;  %p156_p1 = scmp.lt.u32.totalorder %s152_s11, %s303_s0 }
   0x4   :  { %p158_p2 = pnand %p156_p1, %p153_p0 }
   0x6   :  { %161 = shalt.err (!%p158_p2)  }
   0x7   :  { %s220_s16 = smov [#allocation3]  }
   0x8   :  { %8 = dma.hbm_to_smem %s303_s0, 16, %s220_s16, [#allocation2] }
   0x9   :  { %210 = dma.done.wait [#allocation2], 16 }
   0xa   :  { %211 = vsyncadd [#allocation2], 4294967280 }
   0xb   :  { %10 = sfence }
   0xc   :  { %11 = vsyncpa [#allocation5], 0 }
   0xd   :  { %12 = vsyncpa [#allocation6], 0  ;;  %s221_s19 = smov [#allocation4]   ;;  %s162_s23 = scalar_lea.hbm %s304_s1, 1024 }
   0xe   :  { %s18_s20 = sshll.u32 %s221_s19, 4  ;;  %p163_p3 = scmp.ne.s32.totalorder %s304_s1, %s162_s23  ;;  %s19_s20 = int_to_ptr.vmem [resolvable:$true] %s18_s20 }
   0xf   :  { %p166_p4 = scmp.lt.u32.totalorder %s162_s23, %s304_s1 }
  0x11   :  { %p168_p5 = pnand %p166_p4, %p163_p3 }
  0x13   :  { %171 = shalt.err (!%p168_p5)
}
  0x14   :  { %s172_s0 = scalar_lea.vmem %s19_s20, 1024  ;;  %p177_p7 = scmp.lt.s32.totalorder %s19_s20, %s19_s20 }
  0x15   :  { %p173_p6 = scmp.ne.s32.totalorder %s19_s20, %s172_s0  ;;  %p178_p8 = scmp.lt.s32.totalorder %s172_s0, %s172_s0 }
  0x17   :  { %p179_p9 = por %p178_p8, %p177_p7 }
  0x19   :  { %p180_p10 = pnand %p179_p9, %p173_p6 }
  0x1b   :  { %183 = shalt.err (!%p180_p10)
}
  0x1c   :  { %s222_s28 = smov 128   ;;  %s223_s29 = smov 8  }
  0x1d   :  { %24 = dma.hbm_to_vmem [thread:$0]  %s304_s1, 1024, %s19_s20, [#allocation5], %s222_s28, %s222_s28, %s223_s29  }
  0x1e   :  { %212 = dma.done.wait [#allocation5], 1024  }
  0x1f   :  { %213 = vsyncadd [#allocation5], 4294966272  ;;  %s267_s4 = smov 0  }
  0x20 LB: > { %s273_s5 = sshll.u32 %s218_s4, 3  ;;  %vm89_vm0 = vcmask 1040384   ;;  %vm91_vm1 = vcmask 1041408   ;;  %vm93_vm2 = vcmask 1042432   ;;  %vm95_vm3 = vcmask 1043456   ;;  %s34_s4 = sadd.s32 1, %s218_s4   ;;  %s218_s4 = sphi %s267_s4, %s34_s4  }
  0x21   : > { %s37_s1 = sld [smem:[#allocation3 + %s273_s5]]  ;;  %s40_s6 = sadd.s32 1, %s273_s5  ;;  %vm97_vm4 = vcmask 1044480   ;;  %vm99_vm5 = vcmask 1045504   ;;  %vm101_vm6 = vcmask 1046528  }
  0x22   : > { %s41_s7 = sld [smem:[#allocation3 + %s40_s6]]  ;;  %s44_s8 = sadd.s32 2, %s273_s5 }
  0x23   : > { %s45_s9 = sld [smem:[#allocation3 + %s44_s8]]  ;;  %s48_s10 = sadd.s32 3, %s273_s5 }
  0x24   : > { %s49_s11 = sld [smem:[#allocation3 + %s48_s10]]  ;;  %s52_s12 = sadd.s32 4, %s273_s5 }
  0x25   : > { %s53_s13 = sld [smem:[#allocation3 + %s52_s12]]  ;;  %s56_s14 = sadd.s32 5, %s273_s5 }
  0x26   : > { %s57_s15 = sld [smem:[#allocation3 + %s56_s14]]  ;;  %s60_s16 = sadd.s32 6, %s273_s5 }
  0x27   : > { %s61_s17 = sld [smem:[#allocation3 + %s60_s16]]  ;;  %s64_s18 = sadd.s32 7, %s273_s5 }
  0x28   : > { %s38_s19 = scalar_lea.vmem [#allocation4], %s37_s1  ;;  %s42_s20 = scalar_lea.vmem [#allocation4], %s41_s7 }
  0x29   : > { %v39_v0 = vld [vmem:[%s38_s19] sm:$0x1]  ;;  %s65_s21 = sld [smem:[#allocation3 + %s64_s18]]  ;;  %s46_s22 = scalar_lea.vmem [#allocation4], %s45_s9 }
  0x2a   : > { %v43_v1 = vld [vmem:[%s42_s20] sm:$0x1]  ;;  %s50_s23 = scalar_lea.vmem [#allocation4], %s49_s11  ;;  %s104_s0 = scalar_lea.vmem [#allocation7], %s273_s5 }
  0x2b   : > { %v47_v2 = vld [vmem:[%s46_s22] sm:$0x1]  ;;  %v69_v3 = vrot.slane %v43_v1, 7  ;;  %s54_s24 = scalar_lea.vmem [#allocation4], %s53_s13  ;;  %p31_p11 = scmp.ge.s32.totalorder %s34_s4, 2  }
  0x2c   : > { %v51_v4 = vld [vmem:[%s50_s23] sm:$0x1]  ;;  %v72_v5 = vrot.slane %v47_v2, 6  ;;  %s58_s25 = scalar_lea.vmem [#allocation4], %s57_s15  ;;  %s224_s30 = smov (%p31_p11), [#allocation7]  }
  0x2d   : > { %v55_v6 = vld [vmem:[%s54_s24] sm:$0x1]  ;;  %v75_v7 = vrot.slane %v51_v4, 5  ;;  %v90_v8 = vsel %vm89_vm0, %v39_v0, %v69_v3  ;;  %s62_s26 = scalar_lea.vmem [#allocation4], %s61_s17  ;;  %s111_s3 = sshll.u32 (%p31_p11), %s224_s30, 4  ;;  %s112_s3 = int_to_ptr.vmem [resolvable:$true] %s111_s3 }
  0x2e   : > { %v59_v9 = vld [vmem:[%s58_s25] sm:$0x1]  ;;  %v78_v10 = vrot.slane %v55_v6, 4  ;;  %v92_v11 = vsel %vm91_vm1, %v90_v8, %v72_v5  ;;  %s184_s1 = scalar_lea.vmem (%p31_p11), %s112_s3, 256  ;;  %p189_p13 = scmp.lt.s32.totalorder (%p31_p11), %s112_s3, %s112_s3 }
  0x2f   : > { %v63_v12 = vld [vmem:[%s62_s26] sm:$0x1]  ;;  %v81_v13 = vrot.slane %v59_v9, 3  ;;  %v94_v14 = vsel %vm93_vm2, %v92_v11, %v75_v7  ;;  %s66_s27 = scalar_lea.vmem [#allocation4], %s65_s21  ;;  %p185_p12 = scmp.ne.s32.totalorder (%p31_p11), %s112_s3, %s184_s1 }
  0x30   : > { %v84_v15 = vrot.slane %v63_v12, 2  ;;  %v96_v16 = vsel %vm95_vm3, %v94_v14, %v78_v10  ;;  %v67_v17 = vld [vmem:[%s66_s27] sm:$0x1]  ;;  %33 = sbr.rel (!%p31_p11) target bundleno = 32 (0x20), region = 44  ;;  %p190_p0 = scmp.lt.s32.totalorder (%p31_p11), %s184_s1, %s184_s1 }
  0x31   : > { %v98_v18 = vsel %vm97_vm4, %v96_v16, %v81_v13  ;;  %v87_v19 = vrot.slane %v67_v17, 1 }
  0x32   : > { %v100_v20 = vsel %vm99_vm5, %v98_v18, %v84_v15  ;;  %p191_p1 = por (%p31_p11), %p190_p0, %p189_p13 }
  0x33   : > { %v102_v21 = vsel %vm101_vm6, %v100_v20, %v87_v19 }
  0x34   : > { %v103_v22 = vmul.f32 11.313708, %v102_v21  ;;  %p192_p2 = pnand (%p31_p11), %p191_p1, %p185_p12 }
  0x36   : > { %105 = vst [vmem:[%s104_s0] sm:$0xff] %v103_v22 }
  0x37   :  { %195 = shalt.err (!%p192_p2)
}
  0x38   :  { %s196_s5 = scalar_lea.hbm %s305_s2, 256 }
  0x39   :  { %p197_p3 = scmp.ne.s32.totalorder %s305_s2, %s196_s5  ;;  %p200_p4 = scmp.lt.u32.totalorder %s196_s5, %s305_s2 }
  0x3b   :  { %p202_p5 = pnand %p200_p4, %p197_p3 }
  0x3d   :  { %205 = shalt.err (!%p202_p5)
}
  0x3e   :  { %117 = dma.vmem_to_hbm [thread:$0]  %s112_s3, 256, %s305_s2, [#allocation6], %s222_s28, %s222_s28, %s223_s29  }
  0x3f   :  { %214 = dma.done.wait [#allocation6], 256  }
  0x40   :  { %215 = vsyncadd [#allocation6], 4294967040 }
  0x41   :  { %121 = vsyncpa [#allocation5], 1 }
  0x42   :  { %122 = vsyncpa [#allocation6], 1 }

</bundles_post_ra>
